<compile_context>
chip_gen: v7x
topology: tpu7x:2x2x1
jax: 0.10.0
libtpu: 0.0.40
codegen_flags: <defaults>
</compile_context>

<pallas_src>
import functools
import math

import jax
import jax.numpy as jnp
from jax.experimental import pallas as pl
from jax.experimental.pallas import tpu as pltpu

_LANE = 128
_GROUP = 64   # rows per inner-loop chunk: 8 vregs per f32 temporary


def _chip_tuning():
    """Return (block_bytes_per_input, num_splits, vmem_limit_bytes) per TPU gen."""
    kind = ""
    try:
        kind = jax.devices()[0].device_kind.lower()
    except Exception:
        pass
    if "v7" in kind:
        # 2 TensorCores, 64 MiB physical VMEM (32 MiB scoped default), ~3.2 TB/s:
        # large tiles to amortise the ~0.35 us per-step overhead + explicit limit.
        return 6 * 1024 * 1024, 2, 48 * 1024 * 1024
    if "v6" in kind:
        # 1 TC; 2 inputs x 2 buffers x 4 MiB = 16 MiB < 32 MiB scoped default.
        return 4 * 1024 * 1024, 1, None
    # v5e and anything unknown: conservative (v5e scoped default is 16 MiB).
    return 2 * 1024 * 1024, 1, None


def _masked_l1_kernel(pred_ref, gt_ref, sum_ref, cnt_ref, *,
                      threshold, inv_threshold, tile_rows, group_rows,
                      tiles_per_split, total_rows, reduce_groups):
    s = pl.program_id(0)   # parallel split (second TensorCore on v7x)
    i = pl.program_id(1)   # sequential tile within the split

    @pl.when(i == 0)
    def _init():
        sum_ref[...] = jnp.zeros_like(sum_ref)
        cnt_ref[...] = jnp.zeros_like(cnt_ref)

    # Global row offset from the *unclamped* tile index: rows past `total_rows`
    # (ragged last tile, or a duplicated tile produced by the clamped DMA
    # index_map) contribute nothing via the masked branch below.
    tile_idx = s * tiles_per_split + i
    row0 = tile_idx * tile_rows
    n_groups = tile_rows // group_rows          # static

    def _process(g, row_mask):
        if isinstance(g, int):
            r = g * group_rows
        else:
            r = pl.multiple_of(g * group_rows, group_rows)
        gt = gt_ref[pl.ds(r, group_rows), :].astype(jnp.float32)
        pred = pred_ref[pl.ds(r, group_rows), :].astype(jnp.float32)
        valid = gt > 0.0
        if row_mask is not None:
            valid = jnp.logical_and(valid, row_mask(g))
        gt_norm = jnp.minimum(gt, threshold) * inv_threshold
        # jnp.where (SELECT) so garbage/NaN in masked-out rows never leaks.
        err = jnp.where(valid, jnp.abs(gt_norm - pred), 0.0)
        cnt = valid.astype(jnp.float32)
        if reduce_groups:
            # Collapse row groups with elementwise VPU adds; the expensive
            # cross-lane reduce happens exactly once, outside the kernel.
            err = err.reshape(group_rows // 8, 8, _LANE).sum(axis=0)
            cnt = cnt.reshape(group_rows // 8, 8, _LANE).sum(axis=0)
        sum_ref[...] += err
        cnt_ref[...] += cnt

    @pl.when(row0 + tile_rows <= total_rows)
    def _full_tile():                            # common path: no row masking
        if n_groups == 1:
            _process(0, None)
        else:
            @pl.loop(0, n_groups)
            def _(g):
                _process(g, None)

    @pl.when(row0 + tile_rows > total_rows)
    def _ragged_tile():                          # at most one tile per split
        # Hoisted once per ragged tile (JAX does not CSE broadcasted iota).
        iota = jax.lax.broadcasted_iota(jnp.int32, (group_rows, _LANE), 0)

        def row_mask(g):
            return (row0 + g * group_rows + iota) < total_rows

        if n_groups == 1:
            _process(0, row_mask)
        else:
            @pl.loop(0, n_groups)
            def _(g):
                _process(g, row_mask)


def masked_l1_loss(prediction, target, threshold=100.0):
    """prediction: (B, 1, H, W); target: (B, H, W).  Returns scalar float32."""
    pred = jnp.squeeze(prediction, axis=1)       # native dtype, no wrapper upcast
    gt = target
    assert pred.shape == gt.shape, (pred.shape, gt.shape)
    threshold = float(threshold)

    n = math.prod(gt.shape)
    if n % _LANE != 0:
        # TODO(synk): the zero-copy lane-dense (rows, 128) view needs
        # n % 128 == 0; padding/slicing would re-materialise both inputs
        # (2-3x HBM traffic for a mem-bound op), so the ragged-tail case uses
        # XLA's fused single-pass reduction instead of the Pallas kernel.
        p32 = pred.astype(jnp.float32)
        g32 = gt.astype(jnp.float32)
        valid = g32 > 0.0
        err = jnp.where(valid,
                        jnp.abs(jnp.minimum(g32, threshold) / threshold - p32),
                        0.0)
        return jnp.sum(err) / jnp.sum(valid.astype(jnp.float32))

    rows = n // _LANE
    pred2 = pred.reshape(rows, _LANE)            # free (bitcast) reshape
    gt2 = gt.reshape(rows, _LANE)

    block_bytes, num_splits, vmem_limit = _chip_tuning()
    itemsize = max(pred2.dtype.itemsize, gt2.dtype.itemsize)

    if rows <= _GROUP:
        tile_rows = rows                         # single tile == full extent
        group_rows = rows
    else:
        tile_rows = max(_GROUP,
                        (block_bytes // (_LANE * itemsize)) // _GROUP * _GROUP)
        tile_rows = min(tile_rows, rows // _GROUP * _GROUP)
        group_rows = _GROUP

    tiles_total = pl.cdiv(rows, tile_rows)
    splits = max(1, min(num_splits, tiles_total))
    tiles_per_split = pl.cdiv(tiles_total, splits)

    reduce_groups = (group_rows % 8 == 0) and (group_rows > 8)
    acc_rows = 8 if reduce_groups else group_rows

    kernel = functools.partial(
        _masked_l1_kernel,
        threshold=threshold,
        inv_threshold=1.0 / threshold,
        tile_rows=tile_rows,
        group_rows=group_rows,
        tiles_per_split=tiles_per_split,
        total_rows=rows,
        reduce_groups=reduce_groups,
    )

    def in_map(s, i):
        # Clamp so a duplicated tile in a ragged split never issues a fully
        # out-of-bounds DMA; the kernel masks its contribution to zero.
        return (jnp.minimum(s * tiles_per_split + i, tiles_total - 1), 0)

    acc_spec = pl.BlockSpec((None, acc_rows, _LANE), lambda s, i: (s, 0, 0))

    cost = pl.CostEstimate(
        flops=8 * rows * _LANE,
        transcendentals=0,
        bytes_accessed=rows * _LANE * (pred2.dtype.itemsize + gt2.dtype.itemsize)
        + 2 * splits * acc_rows * _LANE * 4,
    )

    sums, cnts = pl.pallas_call(
        kernel,
        out_shape=(
            jax.ShapeDtypeStruct((splits, acc_rows, _LANE), jnp.float32),
            jax.ShapeDtypeStruct((splits, acc_rows, _LANE), jnp.float32),
        ),
        grid_spec=pltpu.PrefetchScalarGridSpec(
            num_scalar_prefetch=0,
            grid=(splits, tiles_per_split),
            in_specs=[
                pl.BlockSpec((tile_rows, _LANE), in_map),
                pl.BlockSpec((tile_rows, _LANE), in_map),
            ],
            out_specs=[acc_spec, acc_spec],
        ),
        compiler_params=pltpu.CompilerParams(
            dimension_semantics=("parallel", "arbitrary"),
            vmem_limit_bytes=vmem_limit,
        ),
        cost_estimate=cost,
    )(pred2, gt2)

    # Single tiny cross-lane reduce + divide on the per-split partials.
    return jnp.sum(sums) / jnp.sum(cnts)


def _reference(prediction, target, threshold=100.0):
    pred = jnp.squeeze(prediction, axis=1).astype(jnp.float32)
    gt = target.astype(jnp.float32)
    valid = gt > 0.0
    gt_n = jnp.minimum(gt, threshold) / threshold
    err = jnp.where(valid, jnp.abs(gt_n - pred), 0.0)
    return jnp.sum(err) / jnp.sum(valid)


if __name__ == "__main__":
    key = jax.random.PRNGKey(0)
    k1, k2 = jax.random.split(key)

    B, H, W = 2, 16, 16
    # target: mix of invalid (<=0), normal, and > threshold values.
    target = jax.random.uniform(k1, (B, H, W), jnp.float32, minval=-30.0, maxval=150.0)
    prediction = jax.random.normal(k2, (B, 1, H, W), jnp.float32)

    loss = jax.block_until_ready(masked_l1_loss(prediction, target, threshold=100.0))
    ref = jax.block_until_ready(_reference(prediction, target, threshold=100.0))
    assert jnp.allclose(loss, ref, rtol=1e-5, atol=1e-6), (loss, ref)

    print("KERNEL_OK")
</pallas_src>

<mosaic_0001>
module attributes {stable_mosaic.version = 11 : i64} {
  func.func @_masked_l1_kernel(%arg0: i32, %arg1: i32, %arg2: memref<4x128xf32, #tpu.memory_space<vmem>>, %arg3: memref<4x128xf32, #tpu.memory_space<vmem>>, %arg4: memref<1x4x128xf32, #tpu.memory_space<vmem>>, %arg5: memref<1x4x128xf32, #tpu.memory_space<vmem>>) attributes {dimension_semantics = [#tpu.dimension_semantics<parallel>, #tpu.dimension_semantics<arbitrary>], iteration_bounds = array<i64: 1, 1>, scalar_prefetch = 0 : i64, scratch_operands = 0 : i64, tpu.core_type = #tpu.core_type<tc>, window_params = [{transform_indices = @transform_0, window_bounds = array<i64: 4, 128>}, {transform_indices = @transform_1, window_bounds = array<i64: 4, 128>}, {transform_indices = @transform_2, window_bounds = array<i64: 1, 4, 128>}, {transform_indices = @transform_3, window_bounds = array<i64: 1, 4, 128>}]} {
    %c0_i32 = arith.constant 0 : i32
    %0 = arith.cmpi eq, %arg1, %c0_i32 : i32
    %1 = arith.extui %0 : i1 to i32
    %c0_i32_0 = arith.constant 0 : i32
    %2 = arith.cmpi ne, %1, %c0_i32_0 : i32
    scf.if %2 {
      %cst = arith.constant 0.000000e+00 : f32
      %14 = vector.broadcast %cst : f32 to vector<4x128xf32>
      %c0 = arith.constant 0 : index
      %c0_7 = arith.constant 0 : index
      %c0_8 = arith.constant 0 : index
      %15 = vector.load %arg4[%c0, %c0_7, %c0_8] : memref<1x4x128xf32, #tpu.memory_space<vmem>>, vector<1x4x128xf32>
      %16 = vector.shape_cast %15 : vector<1x4x128xf32> to vector<4x128xf32>
      %17 = vector.shape_cast %14 : vector<4x128xf32> to vector<1x4x128xf32>
      tpu.vector_store %arg4[%c0, %c0_7, %c0_8], %17 {strides = array<i32>} : memref<1x4x128xf32, #tpu.memory_space<vmem>>, vector<1x4x128xf32>,
      %cst_9 = arith.constant 0.000000e+00 : f32
      %18 = vector.broadcast %cst_9 : f32 to vector<4x128xf32>
      %c0_10 = arith.constant 0 : index
      %c0_11 = arith.constant 0 : index
      %c0_12 = arith.constant 0 : index
      %19 = vector.load %arg5[%c0_10, %c0_11, %c0_12] : memref<1x4x128xf32, #tpu.memory_space<vmem>>, vector<1x4x128xf32>
      %20 = vector.shape_cast %19 : vector<1x4x128xf32> to vector<4x128xf32>
      %21 = vector.shape_cast %18 : vector<4x128xf32> to vector<1x4x128xf32>
      tpu.vector_store %arg5[%c0_10, %c0_11, %c0_12], %21 {strides = array<i32>} : memref<1x4x128xf32, #tpu.memory_space<vmem>>, vector<1x4x128xf32>,
    } else {
    }
    %c1_i32 = arith.constant 1 : i32
    %3 = arith.muli %arg0, %c1_i32 : i32
    %4 = arith.addi %3, %arg1 : i32
    %c4_i32 = arith.constant 4 : i32
    %5 = arith.muli %4, %c4_i32 : i32
    %c4_i32_1 = arith.constant 4 : i32
    %6 = arith.addi %5, %c4_i32_1 : i32
    %c4_i32_2 = arith.constant 4 : i32
    %7 = arith.cmpi sle, %6, %c4_i32_2 : i32
    %8 = arith.extui %7 : i1 to i32
    %c0_i32_3 = arith.constant 0 : i32
    %9 = arith.cmpi ne, %8, %c0_i32_3 : i32
    scf.if %9 {
      %c0 = arith.constant 0 : index
      %c0_7 = arith.constant 0 : index
      %14 = vector.load %arg3[%c0, %c0_7] : memref<4x128xf32, #tpu.memory_space<vmem>>, vector<4x128xf32>
      %c0_8 = arith.constant 0 : index
      %c0_9 = arith.constant 0 : index
      %15 = vector.load %arg2[%c0_8, %c0_9] : memref<4x128xf32, #tpu.memory_space<vmem>>, vector<4x128xf32>
      %cst = arith.constant 0.000000e+00 : f32
      %16 = vector.broadcast %cst : f32 to vector<4x128xf32>
      %17 = arith.cmpf ogt, %14, %16 : vector<4x128xf32>
      %cst_10 = arith.constant 1.000000e+02 : f32
      %18 = vector.broadcast %cst_10 : f32 to vector<4x128xf32>
      %19 = arith.minimumf %14, %18 : vector<4x128xf32>
      %cst_11 = arith.constant 0.00999999977 : f32
      %20 = vector.broadcast %cst_11 : f32 to vector<4x128xf32>
      %21 = arith.mulf %19, %20 : vector<4x128xf32>
      %22 = arith.subf %21, %15 : vector<4x128xf32>
      %23 = math.absf %22 : vector<4x128xf32>
      %cst_12 = arith.constant 0.000000e+00 : f32
      %24 = vector.broadcast %cst_12 : f32 to vector<4x128xf32>
      %25 = arith.select %17, %23, %24 : vector<4x128xi1>, vector<4x128xf32>
      %26 = arith.extui %17 : vector<4x128xi1> to vector<4x128xi32>
      %27 = arith.sitofp %26 : vector<4x128xi32> to vector<4x128xf32>
      %c0_13 = arith.constant 0 : index
      %c0_14 = arith.constant 0 : index
      %c0_15 = arith.constant 0 : index
      %28 = vector.load %arg4[%c0_13, %c0_14, %c0_15] : memref<1x4x128xf32, #tpu.memory_space<vmem>>, vector<1x4x128xf32>
      %29 = vector.shape_cast %28 : vector<1x4x128xf32> to vector<4x128xf32>
      %30 = arith.addf %29, %25 : vector<4x128xf32>
      %c0_16 = arith.constant 0 : index
      %c0_17 = arith.constant 0 : index
      %c0_18 = arith.constant 0 : index
      %31 = vector.load %arg4[%c0_16, %c0_17, %c0_18] : memref<1x4x128xf32, #tpu.memory_space<vmem>>, vector<1x4x128xf32>
      %32 = vector.shape_cast %31 : vector<1x4x128xf32> to vector<4x128xf32>
      %33 = vector.shape_cast %30 : vector<4x128xf32> to vector<1x4x128xf32>
      tpu.vector_store %arg4[%c0_16, %c0_17, %c0_18], %33 {strides = array<i32>} : memref<1x4x128xf32, #tpu.memory_space<vmem>>, vector<1x4x128xf32>,
      %c0_19 = arith.constant 0 : index
      %c0_20 = arith.constant 0 : index
      %c0_21 = arith.constant 0 : index
      %34 = vector.load %arg5[%c0_19, %c0_20, %c0_21] : memref<1x4x128xf32, #tpu.memory_space<vmem>>, vector<1x4x128xf32>
      %35 = vector.shape_cast %34 : vector<1x4x128xf32> to vector<4x128xf32>
      %36 = arith.addf %35, %27 : vector<4x128xf32>
      %c0_22 = arith.constant 0 : index
      %c0_23 = arith.constant 0 : index
      %c0_24 = arith.constant 0 : index
      %37 = vector.load %arg5[%c0_22, %c0_23, %c0_24] : memref<1x4x128xf32, #tpu.memory_space<vmem>>, vector<1x4x128xf32>
      %38 = vector.shape_cast %37 : vector<1x4x128xf32> to vector<4x128xf32>
      %39 = vector.shape_cast %36 : vector<4x128xf32> to vector<1x4x128xf32>
      tpu.vector_store %arg5[%c0_22, %c0_23, %c0_24], %39 {strides = array<i32>} : memref<1x4x128xf32, #tpu.memory_space<vmem>>, vector<1x4x128xf32>,
    } else {
    }
    %c4_i32_4 = arith.constant 4 : i32
    %10 = arith.addi %5, %c4_i32_4 : i32
    %c4_i32_5 = arith.constant 4 : i32
    %11 = arith.cmpi sgt, %10, %c4_i32_5 : i32
    %12 = arith.extui %11 : i1 to i32
    %c0_i32_6 = arith.constant 0 : i32
    %13 = arith.cmpi ne, %12, %c0_i32_6 : i32
    scf.if %13 {
      %14 = tpu.iota {dimensions = array<i32: 0>} : vector<4x128xi32>
      %c0 = arith.constant 0 : index
      %c0_7 = arith.constant 0 : index
      %15 = vector.load %arg3[%c0, %c0_7] : memref<4x128xf32, #tpu.memory_space<vmem>>, vector<4x128xf32>
      %c0_8 = arith.constant 0 : index
      %c0_9 = arith.constant 0 : index
      %16 = vector.load %arg2[%c0_8, %c0_9] : memref<4x128xf32, #tpu.memory_space<vmem>>, vector<4x128xf32>
      %cst = arith.constant 0.000000e+00 : f32
      %17 = vector.broadcast %cst : f32 to vector<4x128xf32>
      %18 = arith.cmpf ogt, %15, %17 : vector<4x128xf32>
      %c0_i32_10 = arith.constant 0 : i32
      %19 = arith.addi %5, %c0_i32_10 : i32
      %20 = vector.broadcast %19 : i32 to vector<4x128xi32>
      %21 = arith.addi %20, %14 : vector<4x128xi32>
      %c4_i32_11 = arith.constant 4 : i32
      %22 = vector.broadcast %c4_i32_11 : i32 to vector<4x128xi32>
      %23 = arith.cmpi slt, %21, %22 : vector<4x128xi32>
      %24 = arith.andi %18, %23 : vector<4x128xi1>
      %cst_12 = arith.constant 1.000000e+02 : f32
      %25 = vector.broadcast %cst_12 : f32 to vector<4x128xf32>
      %26 = arith.minimumf %15, %25 : vector<4x128xf32>
      %cst_13 = arith.constant 0.00999999977 : f32
      %27 = vector.broadcast %cst_13 : f32 to vector<4x128xf32>
      %28 = arith.mulf %26, %27 : vector<4x128xf32>
      %29 = arith.subf %28, %16 : vector<4x128xf32>
      %30 = math.absf %29 : vector<4x128xf32>
      %cst_14 = arith.constant 0.000000e+00 : f32
      %31 = vector.broadcast %cst_14 : f32 to vector<4x128xf32>
      %32 = arith.select %24, %30, %31 : vector<4x128xi1>, vector<4x128xf32>
      %33 = arith.extui %24 : vector<4x128xi1> to vector<4x128xi32>
      %34 = arith.sitofp %33 : vector<4x128xi32> to vector<4x128xf32>
      %c0_15 = arith.constant 0 : index
      %c0_16 = arith.constant 0 : index
      %c0_17 = arith.constant 0 : index
      %35 = vector.load %arg4[%c0_15, %c0_16, %c0_17] : memref<1x4x128xf32, #tpu.memory_space<vmem>>, vector<1x4x128xf32>
      %36 = vector.shape_cast %35 : vector<1x4x128xf32> to vector<4x128xf32>
      %37 = arith.addf %36, %32 : vector<4x128xf32>
      %c0_18 = arith.constant 0 : index
      %c0_19 = arith.constant 0 : index
      %c0_20 = arith.constant 0 : index
      %38 = vector.load %arg4[%c0_18, %c0_19, %c0_20] : memref<1x4x128xf32, #tpu.memory_space<vmem>>, vector<1x4x128xf32>
      %39 = vector.shape_cast %38 : vector<1x4x128xf32> to vector<4x128xf32>
      %40 = vector.shape_cast %37 : vector<4x128xf32> to vector<1x4x128xf32>
      tpu.vector_store %arg4[%c0_18, %c0_19, %c0_20], %40 {strides = array<i32>} : memref<1x4x128xf32, #tpu.memory_space<vmem>>, vector<1x4x128xf32>,
      %c0_21 = arith.constant 0 : index
      %c0_22 = arith.constant 0 : index
      %c0_23 = arith.constant 0 : index
      %41 = vector.load %arg5[%c0_21, %c0_22, %c0_23] : memref<1x4x128xf32, #tpu.memory_space<vmem>>, vector<1x4x128xf32>
      %42 = vector.shape_cast %41 : vector<1x4x128xf32> to vector<4x128xf32>
      %43 = arith.addf %42, %34 : vector<4x128xf32>
      %c0_24 = arith.constant 0 : index
      %c0_25 = arith.constant 0 : index
      %c0_26 = arith.constant 0 : index
      %44 = vector.load %arg5[%c0_24, %c0_25, %c0_26] : memref<1x4x128xf32, #tpu.memory_space<vmem>>, vector<1x4x128xf32>
      %45 = vector.shape_cast %44 : vector<1x4x128xf32> to vector<4x128xf32>
      %46 = vector.shape_cast %43 : vector<4x128xf32> to vector<1x4x128xf32>
      tpu.vector_store %arg5[%c0_24, %c0_25, %c0_26], %46 {strides = array<i32>} : memref<1x4x128xf32, #tpu.memory_space<vmem>>, vector<1x4x128xf32>,
    } else {
    }
    return
  }
  func.func @transform_0(%arg0: i32, %arg1: i32) -> (i32, i32) {
    %c1_i32 = arith.constant 1 : i32
    %0 = arith.muli %arg0, %c1_i32 : i32
    %1 = arith.addi %0, %arg1 : i32
    %c0_i32 = arith.constant 0 : i32
    %2 = arith.minsi %1, %c0_i32 : i32
    %c0_i32_0 = arith.constant 0 : i32
    %c0_i32_1 = arith.constant 0 : i32
    return %2, %c0_i32_0 : i32, i32
  }
  func.func @transform_1(%arg0: i32, %arg1: i32) -> (i32, i32) {
    %c1_i32 = arith.constant 1 : i32
    %0 = arith.muli %arg0, %c1_i32 : i32
    %1 = arith.addi %0, %arg1 : i32
    %c0_i32 = arith.constant 0 : i32
    %2 = arith.minsi %1, %c0_i32 : i32
    %c0_i32_0 = arith.constant 0 : i32
    %c0_i32_1 = arith.constant 0 : i32
    return %2, %c0_i32_0 : i32, i32
  }
  func.func @transform_2(%arg0: i32, %arg1: i32) -> (i32, i32, i32) {
    %c0_i32 = arith.constant 0 : i32
    %c0_i32_0 = arith.constant 0 : i32
    %c0_i32_1 = arith.constant 0 : i32
    return %arg0, %c0_i32, %c0_i32_0 : i32, i32, i32
  }
  func.func @transform_3(%arg0: i32, %arg1: i32) -> (i32, i32, i32) {
    %c0_i32 = arith.constant 0 : i32
    %c0_i32_0 = arith.constant 0 : i32
    %c0_i32_1 = arith.constant 0 : i32
    return %arg0, %c0_i32, %c0_i32_0 : i32, i32, i32
  }
}

</mosaic_0001>

<bundles_post_ra>
// kernel: tpu_custom_call.1
= control target key start
LH: loop header
LB: loop body
LE: loop exit
PB: predicated region body
PF: predicated region fallthrough
CT: control target
= control target key end

     0   :  { %9 = vsyncpa [#allocation3], 0  ;;  %s322_s0 = inlined_call_operand.hbm [shape: f32[4,128], index: 0, kind: input, shape index: {}]   ;;  %s323_s1 = inlined_call_operand.hbm [shape: f32[4,128], index: 1, kind: input, shape index: {}]   ;;  %s324_s2 = inlined_call_operand.hbm [shape: f32[1,4,128], index: 2, kind: output, shape index: {0}]   ;;  %s325_s3 = inlined_call_operand.hbm [shape: f32[1,4,128], index: 3, kind: output, shape index: {1}]  }
   0x1   :  { %10 = vsyncpa [#allocation6], 0 }
   0x2   :  { %11 = vsyncpa [#allocation4], 0 }
   0x3   :  { %12 = vsyncpa [#allocation9], 0  ;;  %s247_s12 = smov [#allocation2]   ;;  %s248_s14 = smov [#allocation5]  }
   0x4   :  { %s24_s13 = sshll.u32 %s247_s12, 4  ;;  %s39_s15 = sshll.u32 %s248_s14, 4  ;;  %s25_s13 = int_to_ptr.vmem [resolvable:$true] %s24_s13  ;;  %s40_s15 = int_to_ptr.vmem [resolvable:$true] %s39_s15 }
   0x5   :  { %s151_s18 = scalar_lea.hbm %s322_s0, 64 }
   0x6   :  { %p152_p0 = scmp.ne.s32.totalorder %s322_s0, %s151_s18  ;;  %p155_p1 = scmp.lt.u32.totalorder %s151_s18, %s322_s0 }
   0x8   :  { %p157_p2 = pnand %p155_p1, %p152_p0 }
   0xa   :  { %160 = shalt.err (!%p157_p2)
}
   0xb   :  { %s161_s23 = scalar_lea.vmem %s25_s13, 64  ;;  %p166_p4 = scmp.lt.s32.totalorder %s25_s13, %s25_s13 }
   0xc   :  { %p162_p3 = scmp.ne.s32.totalorder %s25_s13, %s161_s23  ;;  %p167_p5 = scmp.lt.s32.totalorder %s161_s23, %s161_s23 }
   0xe   :  { %p168_p6 = por %p167_p5, %p166_p4 }
  0x10   :  { %p169_p7 = pnand %p168_p6, %p162_p3 }
  0x12   :  { %172 = shalt.err (!%p169_p7)
}
  0x13   :  { %27 = dma.hbm_to_vmem [thread:$0]  %s322_s0, 64, %s25_s13, [#allocation3]  }
  0x14   :  { %s173_s28 = scalar_lea.hbm %s323_s1, 64 }
  0x15   :  { %p174_p8 = scmp.ne.s32.totalorder %s323_s1, %s173_s28  ;;  %p177_p9 = scmp.lt.u32.totalorder %s173_s28, %s323_s1 }
  0x17   :  { %p179_p10 = pnand %p177_p9, %p174_p8 }
  0x19   :  { %182 = shalt.err (!%p179_p10)
}
  0x1a   :  { %s183_s6 = scalar_lea.vmem %s40_s15, 64  ;;  %p188_p12 = scmp.lt.s32.totalorder %s40_s15, %s40_s15 }
  0x1b   :  { %p184_p11 = scmp.ne.s32.totalorder %s40_s15, %s183_s6  ;;  %p189_p13 = scmp.lt.s32.totalorder %s183_s6, %s183_s6 }
  0x1d   :  { %p190_p0 = por %p189_p13, %p188_p12 }
  0x1f   :  { %p191_p1 = pnand %p190_p0, %p184_p11 }
  0x21   :  { %194 = shalt.err (!%p191_p1)
}
  0x22   :  { %42 = dma.hbm_to_vmem [thread:$0]  %s323_s1, 64, %s40_s15, [#allocation6]  }
  0x23   :  { %239 = dma.done.wait [#allocation3], 64  }
  0x24   :  { %240 = vsyncadd [#allocation3], 4294967232 }
  0x25   :  { %241 = dma.done.wait [#allocation6], 64  }
  0x26   :  { %242 = vsyncadd [#allocation6], 4294967232  ;;  %v249_v0 = vmov 0.0   ;;  %v68_v1 = vld [vmem:[#allocation5] sm:$0xf]  ;;  %s250_s8 = smov [#allocation8]  }
  0x27   :  { %59 = vst [vmem:[#allocation7] sm:$0xf] %v249_v0  ;;  %60 = vst [vmem:[#allocation8] sm:$0xf] %v249_v0  ;;  %s126_s9 = sshll.u32 %s250_s8, 4  ;;  %vm70_vm0 = vcmp.gt.f32.partialorder %v68_v1, 0.0  ;;  %s127_s9 = int_to_ptr.vmem [resolvable:$true] %s126_s9 }
  0x28   :  { %v71_v2 = vmin.f32 %v68_v1, 100.0  ;;  %v144_v4 = vsel %vm70_vm0, 1.0, %v249_v0  ;;  %v69_v5 = vld [vmem:[#allocation2] sm:$0xf]  ;;  %s195_s1 = scalar_lea.vmem %s127_s9, 64  ;;  %p200_p3 = scmp.lt.s32.totalorder %s127_s9, %s127_s9 }
  0x29   :  { %p196_p2 = scmp.ne.s32.totalorder %s127_s9, %s195_s1  ;;  %p201_p4 = scmp.lt.s32.totalorder %s195_s1, %s195_s1 }
  0x2a   :  { %v72_v6 = vmul.f32 0.01, %v71_v2 }
  0x2b   :  { %p202_p5 = por %p201_p4, %p200_p3 }
  0x2c   :  { %v73_v8 = vsub.f32 %v72_v6, %v69_v5 }
  0x2d   :  { %p203_p6 = pnand %p202_p5, %p196_p2 }
  0x2e   :  { %v81_v3 = vld [vmem:[#allocation8] sm:$0xf] }
  0x2f   :  { %v82_v7 = vadd.f32 %v144_v4, %v81_v3 }
  0x31   :  { %83 = vst [vmem:[#allocation8] sm:$0xf] %v82_v7 }
  0x32   :  { %206 = shalt.err (!%p203_p6)
}
  0x33   :  { %s207_s12 = scalar_lea.hbm %s325_s3, 64 }
  0x34   :  { %p208_p7 = scmp.ne.s32.totalorder %s325_s3, %s207_s12  ;;  %p211_p8 = scmp.lt.u32.totalorder %s207_s12, %s325_s3 }
  0x36   :  { %p213_p9 = pnand %p211_p8, %p208_p7 }
  0x38   :  { %216 = shalt.err (!%p213_p9)
}
  0x39   :  { %129 = dma.vmem_to_hbm [thread:$0]  %s127_s9, 64, %s325_s3, [#allocation9]   ;;  %v74_v9 = vand.u32 2147483647, %v73_v8  ;;  %v78_v10 = vld [vmem:[#allocation7] sm:$0xf] }
  0x3a   :  { %s251_s19 = smov [#allocation7]  }
  0x3b   :  { %s116_s20 = sshll.u32 %s251_s19, 4  ;;  %v75_v11 = vsel %vm70_vm0, %v74_v9, 0.0  ;;  %s117_s20 = int_to_ptr.vmem [resolvable:$true] %s116_s20 }
  0x3c   :  { %v79_v12 = vadd.f32 %v78_v10, %v75_v11  ;;  %s217_s21 = scalar_lea.vmem %s117_s20, 64  ;;  %p222_p11 = scmp.lt.s32.totalorder %s117_s20, %s117_s20 }
  0x3d   :  { %p218_p10 = scmp.ne.s32.totalorder %s117_s20, %s217_s21  ;;  %p223_p12 = scmp.lt.s32.totalorder %s217_s21, %s217_s21 }
  0x3e   :  { %80 = vst [vmem:[#allocation7] sm:$0xf] %v79_v12 }
  0x3f   :  { %p224_p13 = por %p223_p12, %p222_p11 }
  0x41   :  { %p225_p0 = pnand %p224_p13, %p218_p10 }
  0x43   :  { %228 = shalt.err (!%p225_p0)
}
  0x44   :  { %s229_s3 = scalar_lea.hbm %s324_s2, 64 }
  0x45   :  { %p230_p1 = scmp.ne.s32.totalorder %s324_s2, %s229_s3  ;;  %p233_p2 = scmp.lt.u32.totalorder %s229_s3, %s324_s2 }
  0x47   :  { %p235_p3 = pnand %p233_p2, %p230_p1 }
  0x49   :  { %238 = shalt.err (!%p235_p3)
}
  0x4a   :  { %119 = dma.vmem_to_hbm [thread:$0]  %s117_s20, 64, %s324_s2, [#allocation4]  }
  0x4b   :  { %243 = dma.done.wait [#allocation4], 64  }
  0x4c   :  { %244 = vsyncadd [#allocation4], 4294967232 }
  0x4d   :  { %245 = dma.done.wait [#allocation9], 64  }
  0x4e   :  { %246 = vsyncadd [#allocation9], 4294967232 }
  0x4f   :  { %136 = vsyncpa [#allocation3], 1 }
  0x50   :  { %137 = vsyncpa [#allocation6], 1 }
  0x51   :  { %138 = vsyncpa [#allocation4], 1 }
  0x52   :  { %139 = vsyncpa [#allocation9], 1 }

</bundles_post_ra>
